<compile_context>
chip_gen: v7x
topology: tpu7x:2x2x1
jax: 0.10.0
libtpu: 0.0.40
codegen_flags: <defaults>
</compile_context>

<pallas_src>
import jax
import jax.numpy as jnp
from jax.experimental import pallas as pl
from jax.experimental.pallas import tpu as pltpu

_LANE = 128
_BLOCK_TARGET_BYTES = 8 * 1024 * 1024   # ~8 MiB blocks (good for v5e/v6e/v7x)
_MIN_SPLIT_BYTES = 2 * 1024 * 1024      # below this a (1,1) grid is fine even on v7x


def _sublane(dtype) -> int:
    # f32 -> 8, bf16 -> 16, int8/fp8 -> 32
    return max(8, 32 // jnp.dtype(dtype).itemsize)


def _round_down_lane(n: int) -> int:
    return (n // _LANE) * _LANE


def _select_tiles(B: int, SD: int, itemsize: int, sub: int, target_bytes: int):
    """Pick (tb, tc) for the lane-dense fast path (SD % 128 == 0).

    Row tile first (prefer full batch), then the column cap is derived from the
    actual row tile.  tc only has to be a multiple of 128, not a divisor of SD:
    pl.cdiv handles a ragged last column block.
    """
    total_bytes = B * SD * itemsize

    # Whole tensor fits one block.
    if total_bytes <= target_bytes:
        tb, tc = B, SD
        # v7x megacore: guarantee >= 2 blocks along a parallel axis when the
        # tensor is non-trivial, so both TensorCores get work.
        if total_bytes >= _MIN_SPLIT_BYTES:
            tc_half = -(-(SD // 2) // _LANE) * _LANE        # ceil(SD/2) -> lane multiple
            if _LANE <= tc_half < SD:
                tc = tc_half                                 # 2 column blocks
            elif B >= 2 * sub:
                tb = max(sub, ((B // 2) // sub) * sub)       # 2+ row blocks
        return tb, tc

    # Prefer keeping the full batch as one row strip; derive the column cap
    # from that actual row tile.
    cap_cols = target_bytes // (B * itemsize)
    if cap_cols >= _LANE:
        tc = min(SD, _round_down_lane(cap_cols))
        return B, tc

    # Batch so large that even a 128-lane full-batch strip exceeds the target:
    # tile rows too.
    tc = min(SD, max(_LANE, _round_down_lane(target_bytes // (sub * itemsize))))
    cap_rows = max(1, target_bytes // (tc * itemsize))
    tb = max(sub, (cap_rows // sub) * sub)
    tb = min(tb, B)
    # Clamp: sublane rounding (sub=16/32 for bf16/int8) must not overshoot the
    # block target / VMEM budget.
    while tb > sub and tb * tc * itemsize > target_bytes:
        tb -= sub
    return tb, tc


def _add_pe_kernel(x_ref, pe_ref, o_ref):
    # x_ref : (TB, TC)  flattened activation tile (rows = batch, cols = seq*d_model)
    # pe_ref: (1,  TC)  matching flattened positional-embedding tile
    # o_ref : (TB, TC)
    o_ref[...] = x_ref[...] + pe_ref[...]   # (1, TC) broadcasts across sublanes


def positional_encoding_forward(x, pe_table, *, donate_x=False,
                                block_target_bytes=_BLOCK_TARGET_BYTES,
                                vmem_limit_bytes=48 * 1024 * 1024):
    """x: (B, S, D); pe_table: (max_len, D) -> (B, S, D) = x + pe_table[:S][None].

    donate_x=True aliases x's buffer as the output (halves peak HBM footprint);
    it only takes effect if the call site also donates x at the jit level
    (jax.jit(..., donate_argnums=...)); otherwise XLA inserts a copy (perf only).
    """
    B, S, D = x.shape
    max_len, D2 = pe_table.shape
    assert D == D2, "d_model mismatch between x and positional table"
    assert S <= max_len, "sequence length exceeds max_len of positional table"
    assert x.dtype == pe_table.dtype, "x and pe_table must share a dtype"

    SD = S * D
    itemsize = jnp.dtype(x.dtype).itemsize
    sub = _sublane(x.dtype)

    x2 = x.reshape(B, SD)  # free for default row-major layout

    if SD % _LANE == 0:
        # Lane-dense fast path: whole table via metadata-only reshape; valid
        # because positions start at 0 so flat offsets of x and pe coincide.
        pe2 = pe_table.reshape(1, max_len * D)
        tb, tc = _select_tiles(B, SD, itemsize, sub, block_target_bytes)
    else:
        # Awkward widths: single full-width column block (block dims equal to
        # the full array dims are always legal).  The masked lane tail only
        # wastes (SD mod 128)/SD of store bandwidth; padding x would instead
        # double HBM traffic for this pure streaming op.
        pe2 = pe_table[:S].reshape(1, SD)
        tc = SD
        cap_rows = max(1, block_target_bytes // (SD * itemsize))
        if B <= cap_rows or B <= sub:
            tb = B
        else:
            tb = max(sub, (cap_rows // sub) * sub)

    # Columns OUTER, rows INNER: the pe block index depends only on the column
    # block, so it is constant across the inner (row) loop and Pallas skips
    # re-DMAing it -> pe is read from HBM exactly once.
    grid = (pl.cdiv(SD, tc), pl.cdiv(B, tb))

    out2 = pl.pallas_call(
        _add_pe_kernel,
        out_shape=jax.ShapeDtypeStruct((B, SD), x.dtype),
        grid=grid,
        in_specs=[
            pl.BlockSpec((tb, tc), lambda c, r: (r, c)),   # x tile
            pl.BlockSpec((1, tc), lambda c, r: (0, c)),    # pe tile (row-resident)
        ],
        out_specs=pl.BlockSpec((tb, tc), lambda c, r: (r, c)),
        input_output_aliases=({0: 0} if donate_x else {}),
        compiler_params=pltpu.CompilerParams(
            dimension_semantics=("parallel", "parallel"),
            vmem_limit_bytes=vmem_limit_bytes,
        ),
    )(x2, pe2)

    return out2.reshape(B, S, D)


def _reference(x, pe_table):
    S = x.shape[1]
    return x + pe_table[:S][None, :, :]


if __name__ == "__main__":
    key = jax.random.PRNGKey(0)

    # (B, S, D, MAX_LEN, block_target_override) — exercises: single-block fast
    # path, non-lane-aligned fallback, >=2 MiB v7x two-block split, ragged
    # column tiling, and row tiling with a resident pe tile.
    cases = [
        (2, 8, 32, 64, None),          # S*D = 256  -> lane-dense, single block
        (4, 16, 128, 32, None),        # S*D = 2048 -> lane-dense, single block
        (2, 3, 24, 10, None),          # S*D = 72   -> full-width fallback path
        (8, 384, 320, 512, None),      # ~3.9 MiB   -> 2-way split (v7x megacore)
        (4, 26, 192, 32, 32 * 1024),   # forced column tiling with ragged tail
        (64, 8, 128, 16, 16 * 1024),   # forced row+column tiling (pe resident)
    ]

    ok = True
    for (B, S, D, MAX_LEN, tgt) in cases:
        key, kx, kpe = jax.random.split(key, 3)
        x = jax.random.normal(kx, (B, S, D), dtype=jnp.float32)
        # nn.Embedding default init: weight ~ N(0, 1); deterministic synthetic init.
        pe_table = jax.random.normal(kpe, (MAX_LEN, D), dtype=jnp.float32)

        kwargs = {} if tgt is None else {"block_target_bytes": tgt}
        out = positional_encoding_forward(x, pe_table, **kwargs)
        out = jax.block_until_ready(out)

        ref = _reference(x, pe_table)
        if out.shape != (B, S, D) or not jnp.allclose(out, ref, atol=1e-6):
            ok = False
            print(f"MISMATCH for shape B={B} S={S} D={D}")

    assert ok, "mismatch vs reference"
    print("KERNEL_OK")
</pallas_src>

<mosaic_0001>
module attributes {stable_mosaic.version = 11 : i64} {
  func.func @_add_pe_kernel(%arg0: i32, %arg1: i32, %arg2: memref<2x256xf32, #tpu.memory_space<vmem>>, %arg3: memref<1x256xf32, #tpu.memory_space<vmem>>, %arg4: memref<2x256xf32, #tpu.memory_space<vmem>>) attributes {dimension_semantics = [#tpu.dimension_semantics<parallel>, #tpu.dimension_semantics<parallel>], iteration_bounds = array<i64: 1, 1>, scalar_prefetch = 0 : i64, scratch_operands = 0 : i64, tpu.core_type = #tpu.core_type<tc>, window_params = [{transform_indices = @transform_0, window_bounds = array<i64: 2, 256>}, {transform_indices = @transform_1, window_bounds = array<i64: 1, 256>}, {transform_indices = @transform_2, window_bounds = array<i64: 2, 256>}]} {
    %c0 = arith.constant 0 : index
    %c0_0 = arith.constant 0 : index
    %0 = vector.load %arg2[%c0, %c0_0] : memref<2x256xf32, #tpu.memory_space<vmem>>, vector<2x256xf32>
    %c0_1 = arith.constant 0 : index
    %c0_2 = arith.constant 0 : index
    %1 = vector.load %arg3[%c0_1, %c0_2] : memref<1x256xf32, #tpu.memory_space<vmem>>, vector<1x256xf32>
    %2 = vector.broadcast %1 : vector<1x256xf32> to vector<2x256xf32>
    %3 = arith.addf %0, %2 : vector<2x256xf32>
    %c0_3 = arith.constant 0 : index
    %c0_4 = arith.constant 0 : index
    %4 = vector.load %arg4[%c0_3, %c0_4] : memref<2x256xf32, #tpu.memory_space<vmem>>, vector<2x256xf32>
    tpu.vector_store %arg4[%c0_3, %c0_4], %3 {strides = array<i32>} : memref<2x256xf32, #tpu.memory_space<vmem>>, vector<2x256xf32>,
    return
  }
  func.func @transform_0(%arg0: i32, %arg1: i32) -> (i32, i32) {
    %c0_i32 = arith.constant 0 : i32
    return %arg1, %arg0 : i32, i32
  }
  func.func @transform_1(%arg0: i32, %arg1: i32) -> (i32, i32) {
    %c0_i32 = arith.constant 0 : i32
    %c0_i32_0 = arith.constant 0 : i32
    return %c0_i32, %arg0 : i32, i32
  }
  func.func @transform_2(%arg0: i32, %arg1: i32) -> (i32, i32) {
    %c0_i32 = arith.constant 0 : i32
    return %arg1, %arg0 : i32, i32
  }
}

</mosaic_0001>

<bundles_post_ra>
// kernel: tpu_custom_call.1
= control target key start
LH: loop header
LB: loop body
LE: loop exit
PB: predicated region body
PF: predicated region fallthrough
CT: control target
= control target key end

     0   :  { %7 = vsyncpa [#allocation3], 0  ;;  %s215_s0 = inlined_call_operand.hbm [shape: f32[2,256], index: 0, kind: input, shape index: {}]   ;;  %s216_s1 = inlined_call_operand.hbm [shape: f32[1,2048], index: 1, kind: input, shape index: {}]   ;;  %s217_s2 = inlined_call_operand.hbm [shape: f32[2,256], index: 2, kind: output, shape index: {}]  }
   0x1   :  { %8 = vsyncpa [#allocation6], 0 }
   0x2   :  { %9 = vsyncpa [#allocation4], 0  ;;  %s150_s9 = smov [#allocation2]   ;;  %s151_s11 = smov [#allocation5]  }
   0x3   :  { %s16_s10 = sshll.u32 %s150_s9, 4  ;;  %s26_s12 = sshll.u32 %s151_s11, 4  ;;  %s17_s10 = int_to_ptr.vmem [resolvable:$true] %s16_s10  ;;  %s169_s12 = int_to_ptr.vmem [resolvable:$true] %s26_s12 }
   0x4   :  { %s78_s15 = scalar_lea.hbm %s215_s0, 64 }
   0x5   :  { %p79_p0 = scmp.ne.s32.totalorder %s215_s0, %s78_s15  ;;  %p82_p1 = scmp.lt.u32.totalorder %s78_s15, %s215_s0 }
   0x7   :  { %p84_p2 = pnand %p82_p1, %p79_p0 }
   0x9   :  { %87 = shalt.err (!%p84_p2)
}
   0xa   :  { %s88_s20 = scalar_lea.vmem %s17_s10, 64  ;;  %p93_p4 = scmp.lt.s32.totalorder %s17_s10, %s17_s10 }
   0xb   :  { %p89_p3 = scmp.ne.s32.totalorder %s17_s10, %s88_s20  ;;  %p94_p5 = scmp.lt.s32.totalorder %s88_s20, %s88_s20 }
   0xd   :  { %p95_p6 = por %p94_p5, %p93_p4 }
   0xf   :  { %p96_p7 = pnand %p95_p6, %p89_p3 }
  0x11   :  { %99 = shalt.err (!%p96_p7)
}
  0x12   :  { %19 = dma.hbm_to_vmem [thread:$0]  %s215_s0, 64, %s17_s10, [#allocation3]  }
  0x13   :  { %s100_s25 = scalar_lea.hbm %s216_s1, 32  ;;  %s102_s30 = scalar_lea.hbm %s216_s1, 256 }
  0x14   :  { %p101_p8 = scmp.ne.s32.totalorder %s216_s1, %s100_s25  ;;  %p103_p9 = scmp.lt.u32.totalorder %s102_s30, %s100_s25 }
  0x15   :  { %p104_p10 = scmp.lt.u32.totalorder %s100_s25, %s216_s1 }
  0x17   :  { %p105_p11 = por %p104_p10, %p103_p9 }
  0x19   :  { %p106_p12 = pnand %p105_p11, %p101_p8 }
  0x1b   :  { %109 = shalt.err (!%p106_p12)
}
  0x1c   :  { %s110_s0 = scalar_lea.vmem %s169_s12, 32  ;;  %p115_p0 = scmp.lt.s32.totalorder %s169_s12, %s169_s12 }
  0x1d   :  { %p111_p13 = scmp.ne.s32.totalorder %s169_s12, %s110_s0  ;;  %p116_p1 = scmp.lt.s32.totalorder %s110_s0, %s110_s0 }
  0x1f   :  { %p117_p2 = por %p116_p1, %p115_p0 }
  0x21   :  { %p118_p3 = pnand %p117_p2, %p111_p13 }
  0x23   :  { %121 = shalt.err (!%p118_p3)
}
  0x24   :  { %29 = dma.hbm_to_vmem [thread:$0]  %s216_s1, 32, %s169_s12, [#allocation6]  }
  0x25   :  { %144 = dma.done.wait [#allocation3], 64  }
  0x26   :  { %145 = vsyncadd [#allocation3], 4294967232 }
  0x27   :  { %146 = dma.done.wait [#allocation6], 32  }
  0x28   :  { %147 = vsyncadd [#allocation6], 4294967264  ;;  %v39_v0 = vlaneseq  ;;  %v152_v1 = vmov 1983009808   ;;  %v37_v7 = vld [vmem:[#allocation5] sm:$0x3] }
  0x29   :  { %v49_v2 = vunpack.c.l.s4 %v152_v1  ;;  %v36_v12 = vld [vmem:[#allocation2] sm:$0xf]  ;;  %s153_s7 = smov [#allocation7]  }
  0x2a   :  { %v40_v3 = vshrl.u32 %v39_v0, 7  ;;  %s64_s8 = sshll.u32 %s153_s7, 4  ;;  %s65_s8 = int_to_ptr.vmem [resolvable:$true] %s64_s8 }
  0x2b   :  { %v50_v6 = vunpack.c.0.s8 %v49_v2  ;;  %s122_s1 = scalar_lea.vmem %s65_s8, 64  ;;  %p127_p5 = scmp.lt.s32.totalorder %s65_s8, %s65_s8 }
  0x2c   :  { %v41_v4 = vsub.s32 0, %v40_v3  ;;  %v45_v5 = vsub.s32 1, %v40_v3  ;;  %p123_p4 = scmp.ne.s32.totalorder %s65_s8, %s122_s1  ;;  %p128_p6 = scmp.lt.s32.totalorder %s122_s1, %s122_s1 }
  0x2d   :  { %v53_v10 = vsub.s32 %v50_v6, %v40_v3 }
  0x2e   :  { %v42_v8 = vrot.slane %v37_v7, %v41_v4  ;;  %v46_v9 = vrot.slane %v37_v7, %v45_v5  ;;  %p129_p7 = por %p128_p6, %p127_p5 }
  0x30   :  { %v47_v11 = vcombine.low %v42_v8, %v46_v9  ;;  %p130_p8 = pnand %p129_p7, %p123_p4 }
  0x32   :  { %v54_v13 = vrot.slane %v47_v11, %v53_v10 }
  0x34   :  { %v56_v14 = vadd.f32 %v54_v13, %v36_v12 }
  0x36   :  { %57 = vst [vmem:[#allocation7] sm:$0xf] %v56_v14 }
  0x37   :  { %133 = shalt.err (!%p130_p8)
}
  0x38   :  { %s134_s11 = scalar_lea.hbm %s217_s2, 64 }
  0x39   :  { %p135_p9 = scmp.ne.s32.totalorder %s217_s2, %s134_s11  ;;  %p138_p10 = scmp.lt.u32.totalorder %s134_s11, %s217_s2 }
  0x3b   :  { %p140_p11 = pnand %p138_p10, %p135_p9 }
  0x3d   :  { %143 = shalt.err (!%p140_p11)
}
  0x3e   :  { %67 = dma.vmem_to_hbm [thread:$0]  %s65_s8, 64, %s217_s2, [#allocation4]  }
  0x3f   :  { %148 = dma.done.wait [#allocation4], 64  }
  0x40   :  { %149 = vsyncadd [#allocation4], 4294967232 }
  0x41   :  { %71 = vsyncpa [#allocation3], 1 }
  0x42   :  { %72 = vsyncpa [#allocation6], 1 }
  0x43   :  { %73 = vsyncpa [#allocation4], 1 }

</bundles_post_ra>
